<compile_context>
chip_gen: v6e
topology: v6e:2x2x1
jax: 0.10.0
libtpu: 0.0.40
codegen_flags: <defaults>
</compile_context>

<pallas_src>
import math

import jax
import jax.numpy as jnp
from jax import lax
from jax.experimental import pallas as pl
from jax.experimental.pallas import tpu as pltpu


def _prefactors(l_max):
    """sphericart prefactors F_l^m = (-1)^m sqrt((2l+1)/(2*pi) * (l-m)!/(l+m)!)."""
    F = {}
    for l in range(l_max + 1):
        for m in range(l + 1):
            F[(l, m)] = ((-1.0) ** m) * math.sqrt(
                (2 * l + 1) / (2.0 * math.pi)
                * math.factorial(l - m) / math.factorial(l + m))
    return F


def _round_up(n, mult):
    return ((n + mult - 1) // mult) * mult


def _make_kernel(l_max, chunk):
    """Kernel over one (3, R, 128) xyz tile -> (n_sph, R, 128) output tile.

    Points live on the (sublane, lane) axes.  An in-kernel fori_loop walks the
    tile in (chunk, 128) sub-slabs so each temporary is only 1-2 vregs and the
    vector register file never spills regardless of the pipelined tile size.
    """
    F = _prefactors(l_max)
    inv_sqrt2 = 1.0 / math.sqrt(2.0)

    def kernel(xyz_ref, out_ref):
        odt = out_ref.dtype
        n_chunks = xyz_ref.shape[1] // chunk  # static (from the block shape)

        def chunk_body(ci, carry):
            r0 = pl.multiple_of(ci * chunk, chunk)
            sl = pl.ds(r0, chunk)
            # f32 compute regardless of storage dtype (v5e has no bf16 VPU);
            # cast to the output dtype only at the store.
            x = xyz_ref[0, sl, :].astype(jnp.float32)
            y = xyz_ref[1, sl, :].astype(jnp.float32)
            z = xyz_ref[2, sl, :].astype(jnp.float32)
            r2 = x * x + y * y + z * z

            def store(k, val):
                if isinstance(val, (int, float)):   # constant harmonic (l=m=0)
                    val = jnp.full((chunk, 128), val, jnp.float32)
                out_ref[k, sl, :] = val.astype(odt)

            # m-outer / l-inner ordering keeps only O(1) temporaries live:
            #   c_m + i s_m = (x + i y)^m ; q = scaled Legendre Q~_{l,m}.
            # The diagonal Q~_{m,m} = (-1)^m (2m-1)!! is coordinate
            # independent, so it stays a Python scalar.
            c_m = None
            s_m = None
            q_mm = 1.0
            for m in range(l_max + 1):
                if m == 1:
                    c_m, s_m = x, y
                    q_mm = -q_mm
                elif m >= 2:
                    c_m, s_m = c_m * x - s_m * y, c_m * y + s_m * x
                    q_mm = float(-(2 * m - 1)) * q_mm

                q_lm2 = None   # Q~_{l-2, m}
                q_lm1 = None   # Q~_{l-1, m}
                for l in range(m, l_max + 1):
                    if l == m:
                        q = q_mm                               # Python scalar
                    elif l == m + 1:
                        q = (float(2 * l - 1) * q_mm) * z      # one vmul
                    else:
                        c1 = float(2 * l - 1)
                        c2 = float(l + m - 1)
                        if isinstance(q_lm2, (int, float)):    # l == m + 2
                            t2 = (c2 * q_lm2) * r2
                        else:
                            t2 = (c2 * r2) * q_lm2
                        q = ((c1 * z) * q_lm1 - t2) * (1.0 / (l - m))
                    base = l * l + l
                    if m == 0:
                        store(base, (F[(l, 0)] * inv_sqrt2) * q)
                    else:
                        t = F[(l, m)] * q
                        store(base + m, t * c_m)
                        store(base - m, t * s_m)
                    q_lm2, q_lm1 = q_lm1, q
            return carry

        lax.fori_loop(0, n_chunks, chunk_body, 0)

    return kernel


class SolidHarmonics:
    """Pallas-TPU equivalent of sphericart.torch.SolidHarmonics (forward only)."""

    def __init__(self, l_max: int, backward_second_derivatives: bool = False,
                 tile_n: int = 8192, output_dtype=None):
        # TODO(synk): backward_second_derivatives only changes autodiff caching
        # in the original extension; the forward pass is unchanged.
        if tile_n <= 0 or tile_n % 2048 != 0:
            raise ValueError("tile_n must be a positive multiple of 2048 "
                             "(128 lanes x 16 sublanes of points).")
        self._l_max = l_max
        self.n_sph = (l_max + 1) ** 2
        self.tile_n = tile_n
        self.output_dtype = None if output_dtype is None else jnp.dtype(output_dtype)
        self._kernels = {}
        # Headroom under v7x's 32 MiB scoped / 64 MiB physical VMEM;
        # v5e / v6e (128 MiB) never hit this at sane tile sizes.
        self._vmem_budget = 24 * 1024 * 1024

    def _kernel_for(self, chunk):
        k = self._kernels.get(chunk)
        if k is None:
            k = _make_kernel(self._l_max, chunk)
            self._kernels[chunk] = k
        return k

    # ---- kernel launch on (3, N) coords; returns lane-dense (n_sph, n_pad) ----
    def _run_t(self, xyz_t):
        three, N = xyz_t.shape
        if three != 3:
            raise ValueError("expected coordinates of shape (3, N)")
        out_dtype = self.output_dtype if self.output_dtype is not None else xyz_t.dtype
        out_item = jnp.dtype(out_dtype).itemsize
        in_item = jnp.dtype(xyz_t.dtype).itemsize
        if N == 0:
            return jnp.zeros((self.n_sph, 0), out_dtype), 0

        # Sub-32-bit outputs pack along sublanes: keep the chunk / tile a
        # multiple of the native (chunk, 128) tile so every store is unmasked.
        chunk = max(8, 32 // out_item)
        quantum = 128 * chunk                       # smallest aligned tile
        tile_n = max(quantum, (self.tile_n // quantum) * quantum)

        tn = min(tile_n, _round_up(N, quantum))
        # v7x has 2 TensorCores: guarantee >= 2 grid steps on the 'parallel'
        # axis once N is big enough for the split to be worth it.
        if N > 2 * quantum and _round_up(N, tn) // tn < 2:
            tn = max(quantum, _round_up((N + 1) // 2, quantum))

        # Re-budget VMEM for large l_max / tiles (double-buffered in + out).
        def vmem_bytes(t):
            return 2 * (3 * t * in_item) + 2 * (self.n_sph * t * out_item)
        while tn > quantum and vmem_bytes(tn) > self._vmem_budget:
            tn = max(quantum, ((tn // 2) // quantum) * quantum)

        n_pad = _round_up(N, tn)
        nb = n_pad // 128
        R = tn // 128

        # Only the tail block is padded; no extra transpose pass here.
        xyz_p = xyz_t if n_pad == N else jnp.pad(xyz_t, ((0, 0), (0, n_pad - N)))
        xyz_b = xyz_p.reshape(3, nb, 128)           # points on (sublane, lane)

        cost = pl.CostEstimate(
            flops=10 * self.n_sph * n_pad,
            transcendentals=0,
            bytes_accessed=3 * n_pad * in_item + self.n_sph * n_pad * out_item)

        out_b = pl.pallas_call(
            self._kernel_for(chunk),
            out_shape=jax.ShapeDtypeStruct((self.n_sph, nb, 128), out_dtype),
            grid=(n_pad // tn,),
            in_specs=[pl.BlockSpec((3, R, 128), lambda i: (0, i, 0))],
            out_specs=pl.BlockSpec((self.n_sph, R, 128), lambda i: (0, i, 0)),
            compiler_params=pltpu.CompilerParams(
                dimension_semantics=("parallel",)),
            cost_estimate=cost,
        )(xyz_b)
        return out_b.reshape(self.n_sph, n_pad), N

    # ---- native lane-dense (n_sph, N) layout (no post-kernel transpose) ----
    def compute_native(self, xyz):
        n, three = xyz.shape
        if three != 3:
            raise ValueError("xyz must have shape (N, 3)")
        out, n = self._run_t(jnp.transpose(xyz))
        return out[:, :n]

    def compute_native_t(self, xyz_t):
        """Fast path: (3, N) coordinates in, (n_sph, N) out.

        Skips the host-side transpose pass (worth ~15-20% of HBM traffic for
        this write-bound kernel at small l_max)."""
        out, n = self._run_t(xyz_t)
        return out[:, :n]

    # ---- torch-compatible (N, n_sph) layout --------------------------------
    def compute(self, xyz):
        # The extra XLA transpose exists only for the torch API layout; an
        # in-kernel XLU transpose would emit 25-lane masked stores at small
        # l_max, so consumers that can read (n_sph, N) should use
        # compute_native() / compute_native_t() instead.
        return jnp.transpose(self.compute_native(xyz))

    def forward(self, xyz):
        return self.compute(xyz)

    __call__ = forward

    def l_max(self):
        return self._l_max

    # TODO(synk): compute_with_gradients / compute_with_hessians /
    # omp_num_threads are not part of the forward hot path and are omitted.
    # TODO(synk): only revisit an MXU coefficient-matrix formulation once
    # n_sph >= 256 (l_max >= 15); below that the systolic array runs empty.


# ---------------------------------------------------------------------------
# plain-JAX reference (original l-outer formulation) for correctness checks
# ---------------------------------------------------------------------------
def _reference_solid_harmonics(xyz, l_max):
    F = _prefactors(l_max)
    x, y, z = xyz[:, 0], xyz[:, 1], xyz[:, 2]
    r2 = x * x + y * y + z * z
    Q = {(0, 0): jnp.ones_like(x)}
    for l in range(1, l_max + 1):
        Q[(l, l)] = -(2 * l - 1) * Q[(l - 1, l - 1)]
        Q[(l, l - 1)] = (2 * l - 1) * z * Q[(l - 1, l - 1)]
        for m in range(l - 2, -1, -1):
            Q[(l, m)] = ((2 * l - 1) * z * Q[(l - 1, m)]
                         - (l + m - 1) * r2 * Q[(l - 2, m)]) / float(l - m)
    c = {0: jnp.ones_like(x)}
    s = {0: jnp.zeros_like(x)}
    for m in range(1, l_max + 1):
        c[m] = c[m - 1] * x - s[m - 1] * y
        s[m] = c[m - 1] * y + s[m - 1] * x
    inv_sqrt2 = 1.0 / math.sqrt(2.0)
    cols = []
    for l in range(l_max + 1):
        for m in range(-l, l + 1):
            am = abs(m)
            if m < 0:
                cols.append(F[(l, am)] * Q[(l, am)] * s[am])
            elif m == 0:
                cols.append((F[(l, 0)] * inv_sqrt2) * Q[(l, 0)])
            else:
                cols.append(F[(l, m)] * Q[(l, m)] * c[m])
    return jnp.stack(cols, axis=-1)  # (N, (l_max+1)^2)


if __name__ == "__main__":
    key = jax.random.PRNGKey(0)
    L_MAX = 4
    N = 64
    n_sph = (L_MAX + 1) ** 2
    xyz = jax.random.normal(key, (N, 3), dtype=jnp.float32)

    calc = SolidHarmonics(L_MAX)
    out = calc(xyz)                                  # torch layout (N, n_sph)
    jax.block_until_ready(out)
    assert out.shape == (N, n_sph), out.shape
    assert out.dtype == jnp.float32

    ref = _reference_solid_harmonics(xyz, L_MAX)
    assert jnp.allclose(out, ref, atol=1e-3, rtol=1e-4)

    # analytic spot checks (orthonormal real solid harmonics)
    c0 = 0.5 / math.sqrt(math.pi)                    # Y_0^0
    c1 = math.sqrt(3.0 / (4.0 * math.pi))            # r * Y_1^m ~ c1 * {y, z, x}
    assert jnp.allclose(out[:, 0], jnp.full((N,), c0), atol=1e-5, rtol=1e-5)
    assert jnp.allclose(out[:, 1], c1 * xyz[:, 1], atol=1e-5, rtol=1e-5)
    assert jnp.allclose(out[:, 2], c1 * xyz[:, 2], atol=1e-5, rtol=1e-5)
    assert jnp.allclose(out[:, 3], c1 * xyz[:, 0], atol=1e-5, rtol=1e-5)

    # native lane-dense (n_sph, N) layout (no post-kernel transpose pass)
    out_nat = calc.compute_native(xyz)
    jax.block_until_ready(out_nat)
    assert out_nat.shape == (n_sph, N)
    assert jnp.allclose(jnp.transpose(out_nat), ref, atol=1e-3, rtol=1e-4)

    # (3, N) fast-path input: also skips the host-side input transpose
    out_nat_t = calc.compute_native_t(jnp.transpose(xyz))
    jax.block_until_ready(out_nat_t)
    assert jnp.allclose(jnp.transpose(out_nat_t), ref, atol=1e-3, rtol=1e-4)

    # multi-grid-step path (exercises the >=2-step clamp that feeds both v7x TCs)
    N2 = 2500
    xyz2 = jax.random.normal(jax.random.PRNGKey(1), (N2, 3), dtype=jnp.float32)
    out2 = calc.compute(xyz2)
    jax.block_until_ready(out2)
    ref2 = _reference_solid_harmonics(xyz2, L_MAX)
    assert out2.shape == (N2, n_sph)
    assert jnp.allclose(out2, ref2, atol=1e-3, rtol=1e-4)

    # bf16 output option (f32 compute, halved output HBM traffic)
    calc_bf16 = SolidHarmonics(L_MAX, output_dtype=jnp.bfloat16)
    out_bf = calc_bf16.compute_native(xyz)
    jax.block_until_ready(out_bf)
    assert out_bf.shape == (n_sph, N) and out_bf.dtype == jnp.bfloat16
    assert jnp.allclose(jnp.transpose(out_bf.astype(jnp.float32)), ref,
                        atol=2e-2, rtol=2e-2)

    print("KERNEL_OK")
</pallas_src>

<mosaic_0001>
module attributes {stable_mosaic.version = 11 : i64} {
  func.func @kernel(%arg0: i32, %arg1: memref<3x8x128xf32, #tpu.memory_space<vmem>>, %arg2: memref<25x8x128xf32, #tpu.memory_space<vmem>>) attributes {dimension_semantics = [#tpu.dimension_semantics<parallel>], iteration_bounds = array<i64: 1>, scalar_prefetch = 0 : i64, scratch_operands = 0 : i64, tpu.core_type = #tpu.core_type<tc>, window_params = [{transform_indices = @transform_0, window_bounds = array<i64: 3, 8, 128>}, {transform_indices = @transform_1, window_bounds = array<i64: 25, 8, 128>}]} {
    %c0_i32 = arith.constant 0 : i32
    %c8_i32 = arith.constant 8 : i32
    %0 = arith.muli %c0_i32, %c8_i32 : i32
    %1 = tpu.assume_multiple %0, 8 : i32
    %c0 = arith.constant 0 : index
    %2 = arith.index_cast %1 : i32 to index
    %c0_0 = arith.constant 0 : index
    %3 = vector.load %arg1[%c0, %2, %c0_0] : memref<3x8x128xf32, #tpu.memory_space<vmem>>, vector<1x8x128xf32>
    %4 = vector.shape_cast %3 : vector<1x8x128xf32> to vector<8x128xf32>
    %c1 = arith.constant 1 : index
    %5 = arith.index_cast %1 : i32 to index
    %c0_1 = arith.constant 0 : index
    %6 = vector.load %arg1[%c1, %5, %c0_1] : memref<3x8x128xf32, #tpu.memory_space<vmem>>, vector<1x8x128xf32>
    %7 = vector.shape_cast %6 : vector<1x8x128xf32> to vector<8x128xf32>
    %c2 = arith.constant 2 : index
    %8 = arith.index_cast %1 : i32 to index
    %c0_2 = arith.constant 0 : index
    %9 = vector.load %arg1[%c2, %8, %c0_2] : memref<3x8x128xf32, #tpu.memory_space<vmem>>, vector<1x8x128xf32>
    %10 = vector.shape_cast %9 : vector<1x8x128xf32> to vector<8x128xf32>
    %11 = arith.mulf %4, %4 : vector<8x128xf32>
    %12 = arith.mulf %7, %7 : vector<8x128xf32>
    %13 = arith.addf %11, %12 : vector<8x128xf32>
    %14 = arith.mulf %10, %10 : vector<8x128xf32>
    %15 = arith.addf %13, %14 : vector<8x128xf32>
    %cst = arith.constant 0.282094806 : f32
    %16 = vector.broadcast %cst : f32 to vector<8x128xf32>
    %c0_3 = arith.constant 0 : index
    %17 = arith.index_cast %1 : i32 to index
    %c0_4 = arith.constant 0 : index
    %18 = vector.load %arg2[%c0_3, %17, %c0_4] : memref<25x8x128xf32, #tpu.memory_space<vmem>>, vector<1x8x128xf32>
    %19 = vector.shape_cast %18 : vector<1x8x128xf32> to vector<8x128xf32>
    %20 = vector.shape_cast %16 : vector<8x128xf32> to vector<1x8x128xf32>
    tpu.vector_store %arg2[%c0_3, %17, %c0_4], %20 {strides = array<i32>} : memref<25x8x128xf32, #tpu.memory_space<vmem>>, vector<1x8x128xf32>,
    %cst_5 = arith.constant 1.000000e+00 : f32
    %21 = vector.broadcast %cst_5 : f32 to vector<8x128xf32>
    %22 = arith.mulf %21, %10 : vector<8x128xf32>
    %cst_6 = arith.constant 0.488602519 : f32
    %23 = vector.broadcast %cst_6 : f32 to vector<8x128xf32>
    %24 = arith.mulf %23, %22 : vector<8x128xf32>
    %c2_7 = arith.constant 2 : index
    %25 = arith.index_cast %1 : i32 to index
    %c0_8 = arith.constant 0 : index
    %26 = vector.load %arg2[%c2_7, %25, %c0_8] : memref<25x8x128xf32, #tpu.memory_space<vmem>>, vector<1x8x128xf32>
    %27 = vector.shape_cast %26 : vector<1x8x128xf32> to vector<8x128xf32>
    %28 = vector.shape_cast %24 : vector<8x128xf32> to vector<1x8x128xf32>
    tpu.vector_store %arg2[%c2_7, %25, %c0_8], %28 {strides = array<i32>} : memref<25x8x128xf32, #tpu.memory_space<vmem>>, vector<1x8x128xf32>,
    %cst_9 = arith.constant 1.000000e+00 : f32
    %29 = vector.broadcast %cst_9 : f32 to vector<8x128xf32>
    %30 = arith.mulf %29, %15 : vector<8x128xf32>
    %cst_10 = arith.constant 3.000000e+00 : f32
    %31 = vector.broadcast %cst_10 : f32 to vector<8x128xf32>
    %32 = arith.mulf %31, %10 : vector<8x128xf32>
    %33 = arith.mulf %32, %22 : vector<8x128xf32>
    %34 = arith.subf %33, %30 : vector<8x128xf32>
    %cst_11 = arith.constant 5.000000e-01 : f32
    %35 = vector.broadcast %cst_11 : f32 to vector<8x128xf32>
    %36 = arith.mulf %34, %35 : vector<8x128xf32>
    %cst_12 = arith.constant 0.63078314 : f32
    %37 = vector.broadcast %cst_12 : f32 to vector<8x128xf32>
    %38 = arith.mulf %37, %36 : vector<8x128xf32>
    %c6 = arith.constant 6 : index
    %39 = arith.index_cast %1 : i32 to index
    %c0_13 = arith.constant 0 : index
    %40 = vector.load %arg2[%c6, %39, %c0_13] : memref<25x8x128xf32, #tpu.memory_space<vmem>>, vector<1x8x128xf32>
    %41 = vector.shape_cast %40 : vector<1x8x128xf32> to vector<8x128xf32>
    %42 = vector.shape_cast %38 : vector<8x128xf32> to vector<1x8x128xf32>
    tpu.vector_store %arg2[%c6, %39, %c0_13], %42 {strides = array<i32>} : memref<25x8x128xf32, #tpu.memory_space<vmem>>, vector<1x8x128xf32>,
    %cst_14 = arith.constant 2.000000e+00 : f32
    %43 = vector.broadcast %cst_14 : f32 to vector<8x128xf32>
    %44 = arith.mulf %43, %15 : vector<8x128xf32>
    %45 = arith.mulf %44, %22 : vector<8x128xf32>
    %cst_15 = arith.constant 5.000000e+00 : f32
    %46 = vector.broadcast %cst_15 : f32 to vector<8x128xf32>
    %47 = arith.mulf %46, %10 : vector<8x128xf32>
    %48 = arith.mulf %47, %36 : vector<8x128xf32>
    %49 = arith.subf %48, %45 : vector<8x128xf32>
    %cst_16 = arith.constant 0.333333343 : f32
    %50 = vector.broadcast %cst_16 : f32 to vector<8x128xf32>
    %51 = arith.mulf %49, %50 : vector<8x128xf32>
    %cst_17 = arith.constant 0.746352672 : f32
    %52 = vector.broadcast %cst_17 : f32 to vector<8x128xf32>
    %53 = arith.mulf %52, %51 : vector<8x128xf32>
    %c12 = arith.constant 12 : index
    %54 = arith.index_cast %1 : i32 to index
    %c0_18 = arith.constant 0 : index
    %55 = vector.load %arg2[%c12, %54, %c0_18] : memref<25x8x128xf32, #tpu.memory_space<vmem>>, vector<1x8x128xf32>
    %56 = vector.shape_cast %55 : vector<1x8x128xf32> to vector<8x128xf32>
    %57 = vector.shape_cast %53 : vector<8x128xf32> to vector<1x8x128xf32>
    tpu.vector_store %arg2[%c12, %54, %c0_18], %57 {strides = array<i32>} : memref<25x8x128xf32, #tpu.memory_space<vmem>>, vector<1x8x128xf32>,
    %cst_19 = arith.constant 3.000000e+00 : f32
    %58 = vector.broadcast %cst_19 : f32 to vector<8x128xf32>
    %59 = arith.mulf %58, %15 : vector<8x128xf32>
    %60 = arith.mulf %59, %36 : vector<8x128xf32>
    %cst_20 = arith.constant 7.000000e+00 : f32
    %61 = vector.broadcast %cst_20 : f32 to vector<8x128xf32>
    %62 = arith.mulf %61, %10 : vector<8x128xf32>
    %63 = arith.mulf %62, %51 : vector<8x128xf32>
    %64 = arith.subf %63, %60 : vector<8x128xf32>
    %cst_21 = arith.constant 2.500000e-01 : f32
    %65 = vector.broadcast %cst_21 : f32 to vector<8x128xf32>
    %66 = arith.mulf %64, %65 : vector<8x128xf32>
    %cst_22 = arith.constant 0.846284389 : f32
    %67 = vector.broadcast %cst_22 : f32 to vector<8x128xf32>
    %68 = arith.mulf %67, %66 : vector<8x128xf32>
    %c20 = arith.constant 20 : index
    %69 = arith.index_cast %1 : i32 to index
    %c0_23 = arith.constant 0 : index
    %70 = vector.load %arg2[%c20, %69, %c0_23] : memref<25x8x128xf32, #tpu.memory_space<vmem>>, vector<1x8x128xf32>
    %71 = vector.shape_cast %70 : vector<1x8x128xf32> to vector<8x128xf32>
    %72 = vector.shape_cast %68 : vector<8x128xf32> to vector<1x8x128xf32>
    tpu.vector_store %arg2[%c20, %69, %c0_23], %72 {strides = array<i32>} : memref<25x8x128xf32, #tpu.memory_space<vmem>>, vector<1x8x128xf32>,
    %cst_24 = arith.constant 0.488602519 : f32
    %73 = vector.broadcast %cst_24 : f32 to vector<8x128xf32>
    %74 = arith.mulf %73, %4 : vector<8x128xf32>
    %c3 = arith.constant 3 : index
    %75 = arith.index_cast %1 : i32 to index
    %c0_25 = arith.constant 0 : index
    %76 = vector.load %arg2[%c3, %75, %c0_25] : memref<25x8x128xf32, #tpu.memory_space<vmem>>, vector<1x8x128xf32>
    %77 = vector.shape_cast %76 : vector<1x8x128xf32> to vector<8x128xf32>
    %78 = vector.shape_cast %74 : vector<8x128xf32> to vector<1x8x128xf32>
    tpu.vector_store %arg2[%c3, %75, %c0_25], %78 {strides = array<i32>} : memref<25x8x128xf32, #tpu.memory_space<vmem>>, vector<1x8x128xf32>,
    %cst_26 = arith.constant 0.488602519 : f32
    %79 = vector.broadcast %cst_26 : f32 to vector<8x128xf32>
    %80 = arith.mulf %79, %7 : vector<8x128xf32>
    %c1_27 = arith.constant 1 : index
    %81 = arith.index_cast %1 : i32 to index
    %c0_28 = arith.constant 0 : index
    %82 = vector.load %arg2[%c1_27, %81, %c0_28] : memref<25x8x128xf32, #tpu.memory_space<vmem>>, vector<1x8x128xf32>
    %83 = vector.shape_cast %82 : vector<1x8x128xf32> to vector<8x128xf32>
    %84 = vector.shape_cast %80 : vector<8x128xf32> to vector<1x8x128xf32>
    tpu.vector_store %arg2[%c1_27, %81, %c0_28], %84 {strides = array<i32>} : memref<25x8x128xf32, #tpu.memory_space<vmem>>, vector<1x8x128xf32>,
    %cst_29 = arith.constant -3.000000e+00 : f32
    %85 = vector.broadcast %cst_29 : f32 to vector<8x128xf32>
    %86 = arith.mulf %85, %10 : vector<8x128xf32>
    %cst_30 = arith.constant -0.3641828 : f32
    %87 = vector.broadcast %cst_30 : f32 to vector<8x128xf32>
    %88 = arith.mulf %87, %86 : vector<8x128xf32>
    %89 = arith.mulf %88, %4 : vector<8x128xf32>
    %c7 = arith.constant 7 : index
    %90 = arith.index_cast %1 : i32 to index
    %c0_31 = arith.constant 0 : index
    %91 = vector.load %arg2[%c7, %90, %c0_31] : memref<25x8x128xf32, #tpu.memory_space<vmem>>, vector<1x8x128xf32>
    %92 = vector.shape_cast %91 : vector<1x8x128xf32> to vector<8x128xf32>
    %93 = vector.shape_cast %89 : vector<8x128xf32> to vector<1x8x128xf32>
    tpu.vector_store %arg2[%c7, %90, %c0_31], %93 {strides = array<i32>} : memref<25x8x128xf32, #tpu.memory_space<vmem>>, vector<1x8x128xf32>,
    %94 = arith.mulf %88, %7 : vector<8x128xf32>
    %c5 = arith.constant 5 : index
    %95 = arith.index_cast %1 : i32 to index
    %c0_32 = arith.constant 0 : index
    %96 = vector.load %arg2[%c5, %95, %c0_32] : memref<25x8x128xf32, #tpu.memory_space<vmem>>, vector<1x8x128xf32>
    %97 = vector.shape_cast %96 : vector<1x8x128xf32> to vector<8x128xf32>
    %98 = vector.shape_cast %94 : vector<8x128xf32> to vector<1x8x128xf32>
    tpu.vector_store %arg2[%c5, %95, %c0_32], %98 {strides = array<i32>} : memref<25x8x128xf32, #tpu.memory_space<vmem>>, vector<1x8x128xf32>,
    %cst_33 = arith.constant -3.000000e+00 : f32
    %99 = vector.broadcast %cst_33 : f32 to vector<8x128xf32>
    %100 = arith.mulf %99, %15 : vector<8x128xf32>
    %cst_34 = arith.constant 5.000000e+00 : f32
    %101 = vector.broadcast %cst_34 : f32 to vector<8x128xf32>
    %102 = arith.mulf %101, %10 : vector<8x128xf32>
    %103 = arith.mulf %102, %86 : vector<8x128xf32>
    %104 = arith.subf %103, %100 : vector<8x128xf32>
    %cst_35 = arith.constant 5.000000e-01 : f32
    %105 = vector.broadcast %cst_35 : f32 to vector<8x128xf32>
    %106 = arith.mulf %104, %105 : vector<8x128xf32>
    %cst_36 = arith.constant -0.304697186 : f32
    %107 = vector.broadcast %cst_36 : f32 to vector<8x128xf32>
    %108 = arith.mulf %107, %106 : vector<8x128xf32>
    %109 = arith.mulf %108, %4 : vector<8x128xf32>
    %c13 = arith.constant 13 : index
    %110 = arith.index_cast %1 : i32 to index
    %c0_37 = arith.constant 0 : index
    %111 = vector.load %arg2[%c13, %110, %c0_37] : memref<25x8x128xf32, #tpu.memory_space<vmem>>, vector<1x8x128xf32>
    %112 = vector.shape_cast %111 : vector<1x8x128xf32> to vector<8x128xf32>
    %113 = vector.shape_cast %109 : vector<8x128xf32> to vector<1x8x128xf32>
    tpu.vector_store %arg2[%c13, %110, %c0_37], %113 {strides = array<i32>} : memref<25x8x128xf32, #tpu.memory_space<vmem>>, vector<1x8x128xf32>,
    %114 = arith.mulf %108, %7 : vector<8x128xf32>
    %c11 = arith.constant 11 : index
    %115 = arith.index_cast %1 : i32 to index
    %c0_38 = arith.constant 0 : index
    %116 = vector.load %arg2[%c11, %115, %c0_38] : memref<25x8x128xf32, #tpu.memory_space<vmem>>, vector<1x8x128xf32>
    %117 = vector.shape_cast %116 : vector<1x8x128xf32> to vector<8x128xf32>
    %118 = vector.shape_cast %114 : vector<8x128xf32> to vector<1x8x128xf32>
    tpu.vector_store %arg2[%c11, %115, %c0_38], %118 {strides = array<i32>} : memref<25x8x128xf32, #tpu.memory_space<vmem>>, vector<1x8x128xf32>,
    %cst_39 = arith.constant 4.000000e+00 : f32
    %119 = vector.broadcast %cst_39 : f32 to vector<8x128xf32>
    %120 = arith.mulf %119, %15 : vector<8x128xf32>
    %121 = arith.mulf %120, %86 : vector<8x128xf32>
    %cst_40 = arith.constant 7.000000e+00 : f32
    %122 = vector.broadcast %cst_40 : f32 to vector<8x128xf32>
    %123 = arith.mulf %122, %10 : vector<8x128xf32>
    %124 = arith.mulf %123, %106 : vector<8x128xf32>
    %125 = arith.subf %124, %121 : vector<8x128xf32>
    %cst_41 = arith.constant 0.333333343 : f32
    %126 = vector.broadcast %cst_41 : f32 to vector<8x128xf32>
    %127 = arith.mulf %125, %126 : vector<8x128xf32>
    %cst_42 = arith.constant -0.267618626 : f32
    %128 = vector.broadcast %cst_42 : f32 to vector<8x128xf32>
    %129 = arith.mulf %128, %127 : vector<8x128xf32>
    %130 = arith.mulf %129, %4 : vector<8x128xf32>
    %c21 = arith.constant 21 : index
    %131 = arith.index_cast %1 : i32 to index
    %c0_43 = arith.constant 0 : index
    %132 = vector.load %arg2[%c21, %131, %c0_43] : memref<25x8x128xf32, #tpu.memory_space<vmem>>, vector<1x8x128xf32>
    %133 = vector.shape_cast %132 : vector<1x8x128xf32> to vector<8x128xf32>
    %134 = vector.shape_cast %130 : vector<8x128xf32> to vector<1x8x128xf32>
    tpu.vector_store %arg2[%c21, %131, %c0_43], %134 {strides = array<i32>} : memref<25x8x128xf32, #tpu.memory_space<vmem>>, vector<1x8x128xf32>,
    %135 = arith.mulf %129, %7 : vector<8x128xf32>
    %c19 = arith.constant 19 : index
    %136 = arith.index_cast %1 : i32 to index
    %c0_44 = arith.constant 0 : index
    %137 = vector.load %arg2[%c19, %136, %c0_44] : memref<25x8x128xf32, #tpu.memory_space<vmem>>, vector<1x8x128xf32>
    %138 = vector.shape_cast %137 : vector<1x8x128xf32> to vector<8x128xf32>
    %139 = vector.shape_cast %135 : vector<8x128xf32> to vector<1x8x128xf32>
    tpu.vector_store %arg2[%c19, %136, %c0_44], %139 {strides = array<i32>} : memref<25x8x128xf32, #tpu.memory_space<vmem>>, vector<1x8x128xf32>,
    %140 = arith.mulf %4, %4 : vector<8x128xf32>
    %141 = arith.mulf %7, %7 : vector<8x128xf32>
    %142 = arith.subf %140, %141 : vector<8x128xf32>
    %143 = arith.mulf %4, %7 : vector<8x128xf32>
    %144 = arith.mulf %7, %4 : vector<8x128xf32>
    %145 = arith.addf %143, %144 : vector<8x128xf32>
    %cst_45 = arith.constant 0.546274245 : f32
    %146 = vector.broadcast %cst_45 : f32 to vector<8x128xf32>
    %147 = arith.mulf %146, %142 : vector<8x128xf32>
    %c8 = arith.constant 8 : index
    %148 = arith.index_cast %1 : i32 to index
    %c0_46 = arith.constant 0 : index
    %149 = vector.load %arg2[%c8, %148, %c0_46] : memref<25x8x128xf32, #tpu.memory_space<vmem>>, vector<1x8x128xf32>
    %150 = vector.shape_cast %149 : vector<1x8x128xf32> to vector<8x128xf32>
    %151 = vector.shape_cast %147 : vector<8x128xf32> to vector<1x8x128xf32>
    tpu.vector_store %arg2[%c8, %148, %c0_46], %151 {strides = array<i32>} : memref<25x8x128xf32, #tpu.memory_space<vmem>>, vector<1x8x128xf32>,
    %cst_47 = arith.constant 0.546274245 : f32
    %152 = vector.broadcast %cst_47 : f32 to vector<8x128xf32>
    %153 = arith.mulf %152, %145 : vector<8x128xf32>
    %c4 = arith.constant 4 : index
    %154 = arith.index_cast %1 : i32 to index
    %c0_48 = arith.constant 0 : index
    %155 = vector.load %arg2[%c4, %154, %c0_48] : memref<25x8x128xf32, #tpu.memory_space<vmem>>, vector<1x8x128xf32>
    %156 = vector.shape_cast %155 : vector<1x8x128xf32> to vector<8x128xf32>
    %157 = vector.shape_cast %153 : vector<8x128xf32> to vector<1x8x128xf32>
    tpu.vector_store %arg2[%c4, %154, %c0_48], %157 {strides = array<i32>} : memref<25x8x128xf32, #tpu.memory_space<vmem>>, vector<1x8x128xf32>,
    %cst_49 = arith.constant 1.500000e+01 : f32
    %158 = vector.broadcast %cst_49 : f32 to vector<8x128xf32>
    %159 = arith.mulf %158, %10 : vector<8x128xf32>
    %cst_50 = arith.constant 0.0963537171 : f32
    %160 = vector.broadcast %cst_50 : f32 to vector<8x128xf32>
    %161 = arith.mulf %160, %159 : vector<8x128xf32>
    %162 = arith.mulf %161, %142 : vector<8x128xf32>
    %c14 = arith.constant 14 : index
    %163 = arith.index_cast %1 : i32 to index
    %c0_51 = arith.constant 0 : index
    %164 = vector.load %arg2[%c14, %163, %c0_51] : memref<25x8x128xf32, #tpu.memory_space<vmem>>, vector<1x8x128xf32>
    %165 = vector.shape_cast %164 : vector<1x8x128xf32> to vector<8x128xf32>
    %166 = vector.shape_cast %162 : vector<8x128xf32> to vector<1x8x128xf32>
    tpu.vector_store %arg2[%c14, %163, %c0_51], %166 {strides = array<i32>} : memref<25x8x128xf32, #tpu.memory_space<vmem>>, vector<1x8x128xf32>,
    %167 = arith.mulf %161, %145 : vector<8x128xf32>
    %c10 = arith.constant 10 : index
    %168 = arith.index_cast %1 : i32 to index
    %c0_52 = arith.constant 0 : index
    %169 = vector.load %arg2[%c10, %168, %c0_52] : memref<25x8x128xf32, #tpu.memory_space<vmem>>, vector<1x8x128xf32>
    %170 = vector.shape_cast %169 : vector<1x8x128xf32> to vector<8x128xf32>
    %171 = vector.shape_cast %167 : vector<8x128xf32> to vector<1x8x128xf32>
    tpu.vector_store %arg2[%c10, %168, %c0_52], %171 {strides = array<i32>} : memref<25x8x128xf32, #tpu.memory_space<vmem>>, vector<1x8x128xf32>,
    %cst_53 = arith.constant 1.500000e+01 : f32
    %172 = vector.broadcast %cst_53 : f32 to vector<8x128xf32>
    %173 = arith.mulf %172, %15 : vector<8x128xf32>
    %cst_54 = arith.constant 7.000000e+00 : f32
    %174 = vector.broadcast %cst_54 : f32 to vector<8x128xf32>
    %175 = arith.mulf %174, %10 : vector<8x128xf32>
    %176 = arith.mulf %175, %159 : vector<8x128xf32>
    %177 = arith.subf %176, %173 : vector<8x128xf32>
    %cst_55 = arith.constant 5.000000e-01 : f32
    %178 = vector.broadcast %cst_55 : f32 to vector<8x128xf32>
    %179 = arith.mulf %177, %178 : vector<8x128xf32>
    %cst_56 = arith.constant 0.063078314 : f32
    %180 = vector.broadcast %cst_56 : f32 to vector<8x128xf32>
    %181 = arith.mulf %180, %179 : vector<8x128xf32>
    %182 = arith.mulf %181, %142 : vector<8x128xf32>
    %c22 = arith.constant 22 : index
    %183 = arith.index_cast %1 : i32 to index
    %c0_57 = arith.constant 0 : index
    %184 = vector.load %arg2[%c22, %183, %c0_57] : memref<25x8x128xf32, #tpu.memory_space<vmem>>, vector<1x8x128xf32>
    %185 = vector.shape_cast %184 : vector<1x8x128xf32> to vector<8x128xf32>
    %186 = vector.shape_cast %182 : vector<8x128xf32> to vector<1x8x128xf32>
    tpu.vector_store %arg2[%c22, %183, %c0_57], %186 {strides = array<i32>} : memref<25x8x128xf32, #tpu.memory_space<vmem>>, vector<1x8x128xf32>,
    %187 = arith.mulf %181, %145 : vector<8x128xf32>
    %c18 = arith.constant 18 : index
    %188 = arith.index_cast %1 : i32 to index
    %c0_58 = arith.constant 0 : index
    %189 = vector.load %arg2[%c18, %188, %c0_58] : memref<25x8x128xf32, #tpu.memory_space<vmem>>, vector<1x8x128xf32>
    %190 = vector.shape_cast %189 : vector<1x8x128xf32> to vector<8x128xf32>
    %191 = vector.shape_cast %187 : vector<8x128xf32> to vector<1x8x128xf32>
    tpu.vector_store %arg2[%c18, %188, %c0_58], %191 {strides = array<i32>} : memref<25x8x128xf32, #tpu.memory_space<vmem>>, vector<1x8x128xf32>,
    %192 = arith.mulf %142, %4 : vector<8x128xf32>
    %193 = arith.mulf %145, %7 : vector<8x128xf32>
    %194 = arith.subf %192, %193 : vector<8x128xf32>
    %195 = arith.mulf %142, %7 : vector<8x128xf32>
    %196 = arith.mulf %145, %4 : vector<8x128xf32>
    %197 = arith.addf %195, %196 : vector<8x128xf32>
    %cst_59 = arith.constant 0.590043604 : f32
    %198 = vector.broadcast %cst_59 : f32 to vector<8x128xf32>
    %199 = arith.mulf %198, %194 : vector<8x128xf32>
    %c15 = arith.constant 15 : index
    %200 = arith.index_cast %1 : i32 to index
    %c0_60 = arith.constant 0 : index
    %201 = vector.load %arg2[%c15, %200, %c0_60] : memref<25x8x128xf32, #tpu.memory_space<vmem>>, vector<1x8x128xf32>
    %202 = vector.shape_cast %201 : vector<1x8x128xf32> to vector<8x128xf32>
    %203 = vector.shape_cast %199 : vector<8x128xf32> to vector<1x8x128xf32>
    tpu.vector_store %arg2[%c15, %200, %c0_60], %203 {strides = array<i32>} : memref<25x8x128xf32, #tpu.memory_space<vmem>>, vector<1x8x128xf32>,
    %cst_61 = arith.constant 0.590043604 : f32
    %204 = vector.broadcast %cst_61 : f32 to vector<8x128xf32>
    %205 = arith.mulf %204, %197 : vector<8x128xf32>
    %c9 = arith.constant 9 : index
    %206 = arith.index_cast %1 : i32 to index
    %c0_62 = arith.constant 0 : index
    %207 = vector.load %arg2[%c9, %206, %c0_62] : memref<25x8x128xf32, #tpu.memory_space<vmem>>, vector<1x8x128xf32>
    %208 = vector.shape_cast %207 : vector<1x8x128xf32> to vector<8x128xf32>
    %209 = vector.shape_cast %205 : vector<8x128xf32> to vector<1x8x128xf32>
    tpu.vector_store %arg2[%c9, %206, %c0_62], %209 {strides = array<i32>} : memref<25x8x128xf32, #tpu.memory_space<vmem>>, vector<1x8x128xf32>,
    %cst_63 = arith.constant -1.050000e+02 : f32
    %210 = vector.broadcast %cst_63 : f32 to vector<8x128xf32>
    %211 = arith.mulf %210, %10 : vector<8x128xf32>
    %cst_64 = arith.constant -0.0168583877 : f32
    %212 = vector.broadcast %cst_64 : f32 to vector<8x128xf32>
    %213 = arith.mulf %212, %211 : vector<8x128xf32>
    %214 = arith.mulf %213, %194 : vector<8x128xf32>
    %c23 = arith.constant 23 : index
    %215 = arith.index_cast %1 : i32 to index
    %c0_65 = arith.constant 0 : index
    %216 = vector.load %arg2[%c23, %215, %c0_65] : memref<25x8x128xf32, #tpu.memory_space<vmem>>, vector<1x8x128xf32>
    %217 = vector.shape_cast %216 : vector<1x8x128xf32> to vector<8x128xf32>
    %218 = vector.shape_cast %214 : vector<8x128xf32> to vector<1x8x128xf32>
    tpu.vector_store %arg2[%c23, %215, %c0_65], %218 {strides = array<i32>} : memref<25x8x128xf32, #tpu.memory_space<vmem>>, vector<1x8x128xf32>,
    %219 = arith.mulf %213, %197 : vector<8x128xf32>
    %c17 = arith.constant 17 : index
    %220 = arith.index_cast %1 : i32 to index
    %c0_66 = arith.constant 0 : index
    %221 = vector.load %arg2[%c17, %220, %c0_66] : memref<25x8x128xf32, #tpu.memory_space<vmem>>, vector<1x8x128xf32>
    %222 = vector.shape_cast %221 : vector<1x8x128xf32> to vector<8x128xf32>
    %223 = vector.shape_cast %219 : vector<8x128xf32> to vector<1x8x128xf32>
    tpu.vector_store %arg2[%c17, %220, %c0_66], %223 {strides = array<i32>} : memref<25x8x128xf32, #tpu.memory_space<vmem>>, vector<1x8x128xf32>,
    %224 = arith.mulf %194, %4 : vector<8x128xf32>
    %225 = arith.mulf %197, %7 : vector<8x128xf32>
    %226 = arith.subf %224, %225 : vector<8x128xf32>
    %227 = arith.mulf %194, %7 : vector<8x128xf32>
    %228 = arith.mulf %197, %4 : vector<8x128xf32>
    %229 = arith.addf %227, %228 : vector<8x128xf32>
    %cst_67 = arith.constant 0.625835716 : f32
    %230 = vector.broadcast %cst_67 : f32 to vector<8x128xf32>
    %231 = arith.mulf %230, %226 : vector<8x128xf32>
    %c24 = arith.constant 24 : index
    %232 = arith.index_cast %1 : i32 to index
    %c0_68 = arith.constant 0 : index
    %233 = vector.load %arg2[%c24, %232, %c0_68] : memref<25x8x128xf32, #tpu.memory_space<vmem>>, vector<1x8x128xf32>
    %234 = vector.shape_cast %233 : vector<1x8x128xf32> to vector<8x128xf32>
    %235 = vector.shape_cast %231 : vector<8x128xf32> to vector<1x8x128xf32>
    tpu.vector_store %arg2[%c24, %232, %c0_68], %235 {strides = array<i32>} : memref<25x8x128xf32, #tpu.memory_space<vmem>>, vector<1x8x128xf32>,
    %cst_69 = arith.constant 0.625835716 : f32
    %236 = vector.broadcast %cst_69 : f32 to vector<8x128xf32>
    %237 = arith.mulf %236, %229 : vector<8x128xf32>
    %c16 = arith.constant 16 : index
    %238 = arith.index_cast %1 : i32 to index
    %c0_70 = arith.constant 0 : index
    %239 = vector.load %arg2[%c16, %238, %c0_70] : memref<25x8x128xf32, #tpu.memory_space<vmem>>, vector<1x8x128xf32>
    %240 = vector.shape_cast %239 : vector<1x8x128xf32> to vector<8x128xf32>
    %241 = vector.shape_cast %237 : vector<8x128xf32> to vector<1x8x128xf32>
    tpu.vector_store %arg2[%c16, %238, %c0_70], %241 {strides = array<i32>} : memref<25x8x128xf32, #tpu.memory_space<vmem>>, vector<1x8x128xf32>,
    %c1_i32 = arith.constant 1 : i32
    return
  }
  func.func @transform_0(%arg0: i32) -> (i32, i32, i32) {
    %c0_i32 = arith.constant 0 : i32
    %c0_i32_0 = arith.constant 0 : i32
    %c0_i32_1 = arith.constant 0 : i32
    return %c0_i32, %arg0, %c0_i32_0 : i32, i32, i32
  }
  func.func @transform_1(%arg0: i32) -> (i32, i32, i32) {
    %c0_i32 = arith.constant 0 : i32
    %c0_i32_0 = arith.constant 0 : i32
    %c0_i32_1 = arith.constant 0 : i32
    return %c0_i32, %arg0, %c0_i32_0 : i32, i32, i32
  }
}

</mosaic_0001>

<bundles_post_ra>
// kernel: tpu_custom_call.1
= control target key start
LH: loop header
LB: loop body
LE: loop exit
PB: predicated region body
PF: predicated region fallthrough
CT: control target
= control target key end

     0   :  { %6 = vsyncpa [#allocation3], 0  ;;  %s340_s0 = inlined_call_operand.hbm [shape: f32[3,8,128], index: 0, kind: input, shape index: {}]   ;;  %s341_s1 = inlined_call_operand.hbm [shape: f32[25,8,128], index: 1, kind: output, shape index: {}]  }
   0x1   :  { %7 = vsyncpa [#allocation4], 0  ;;  %s275_s6 = smov [#allocation2]  }
   0x2   :  { %s13_s7 = sshll.u32 %s275_s6, 4  ;;  %s14_s7 = int_to_ptr.vmem [resolvable:$true] %s13_s7 }
   0x3   :  { %s239_s8 = scalar_lea.vmem %s14_s7, 384  ;;  %p244_p1 = scmp.lt.s32.totalorder %s14_s7, %s14_s7 }
   0x4   :  { %p240_p0 = scmp.ne.s32.totalorder %s14_s7, %s239_s8  ;;  %p245_p2 = scmp.lt.s32.totalorder %s239_s8, %s239_s8 }
   0x6   :  { %p246_p3 = por %p245_p2, %p244_p1 }
   0x8   :  { %p247_p4 = pnand %p246_p3, %p240_p0 }
   0xa   :  { %250 = shalt.err (!%p247_p4)
}
   0xb   :  { %s276_s9 = smov 128   ;;  %s277_s10 = smov 8  }
   0xc   :  { %19 = dma.hbm_to_vmem [thread:$0]  %s340_s0, 384, %s14_s7, [#allocation3], %s276_s9, %s276_s9, %s277_s10  }
   0xd   :  { %271 = dma.done.wait [#allocation3], 384  }
   0xe   :  { %272 = vsyncadd [#allocation3], 4294966912  ;;  %v278_v0 = vmov 0.2820948   ;;  %v29_v1 = vld [vmem:[#allocation2 + $0x10] sm:$0xff]  ;;  %v296_v2 = vld [vmem:[#allocation2] sm:$0xff] }
   0xf   :  { %35 = vst [vmem:[#allocation5] sm:$0xff] %v278_v0  ;;  %v298_v3 = vld [vmem:[#allocation2 + $0x8] sm:$0xff]  ;;  %v36_v4 = vmul.f32 0.48860252, %v29_v1  ;;  %v30_v5 = vmul.f32 %v296_v2, %v296_v2  ;;  %v33_v7 = vmul.f32 %v29_v1, %v29_v1  ;;  %v39_v8 = vmul.f32 3.0, %v29_v1  ;;  %s279_s0 = smov [#allocation5]  }
  0x10   :  { %v31_v6 = vmul.f32 %v298_v3, %v298_v3  ;;  %v49_v9 = vmul.f32 5.0, %v29_v1  ;;  %v304_v10 = vmul.f32 7.0, %v29_v1  ;;  %v67_v11 = vmul.f32 0.48860252, %v296_v2  ;;  %s188_s13 = sshll.u32 %s279_s0, 4  ;;  %s189_s13 = int_to_ptr.vmem [resolvable:$true] %s188_s13 }
  0x11   :  { %38 = vst [vmem:[#allocation5 + $0x10] sm:$0xff] %v36_v4  ;;  %v71_v13 = vmul.f32 0.48860252, %v298_v3  ;;  %v74_v14 = vmul.f32 -3.0, %v29_v1  ;;  %v40_v16 = vmul.f32 %v39_v8, %v29_v1  ;;  %v112_v17 = vmul.f32 %v298_v3, %v296_v2  ;;  %s251_s14 = scalar_lea.vmem %s189_s13, 3200  ;;  %p256_p6 = scmp.lt.s32.totalorder %s189_s13, %s189_s13 }
  0x12   :  { %v32_v12 = vadd.f32 %v31_v6, %v30_v5  ;;  %v308_v15 = vsub.f32 %v30_v5, %v31_v6  ;;  %70 = vst [vmem:[#allocation5 + $0x18] sm:$0xff] %v67_v11  ;;  %v122_v18 = vmul.f32 15.0, %v29_v1  ;;  %v159_v19 = vmul.f32 -105.0, %v29_v1  ;;  %p252_p5 = scmp.ne.s32.totalorder %s189_s13, %s251_s14  ;;  %p257_p7 = scmp.lt.s32.totalorder %s251_s14, %s251_s14 }
  0x13   :  { %73 = vst [vmem:[#allocation5 + $0x8] sm:$0xff] %v71_v13  ;;  %v75_v21 = vmul.f32 -0.3641828, %v74_v14  ;;  %v85_v22 = vmul.f32 %v74_v14, %v49_v9  ;;  %v113_v24 = vadd.f32 %v112_v17, %v112_v17 }
  0x14   :  { %v34_v20 = vadd.f32 %v33_v7, %v32_v12  ;;  %v114_v23 = vmul.f32 0.54627424, %v308_v15  ;;  %v123_v25 = vmul.f32 0.09635372, %v122_v18  ;;  %v133_v26 = vmul.f32 %v122_v18, %v304_v10  ;;  %p258_p8 = por %p257_p7, %p256_p6 }
  0x15   :  { %v145_v27 = vmul.f32 %v308_v15, %v296_v2  ;;  %v76_v31 = vmul.f32 %v75_v21, %v296_v2  ;;  %v80_v32 = vmul.f32 %v75_v21, %v298_v3  ;;  %v118_v35 = vmul.f32 0.54627424, %v113_v24 }
  0x16   :  { %v41_v28 = vsub.f32 %v40_v16, %v34_v20  ;;  %v47_v29 = vmul.f32 2.0, %v34_v20  ;;  %v57_v30 = vmul.f32 3.0, %v34_v20  ;;  %117 = vst [vmem:[#allocation5 + $0x40] sm:$0xff] %v114_v23  ;;  %v84_v33 = vmul.f32 -3.0, %v34_v20  ;;  %p259_p9 = pnand %p258_p8, %p252_p5 }
  0x17   :  { %v97_v34 = vmul.f32 4.0, %v34_v20  ;;  %79 = vst [vmem:[#allocation5 + $0x38] sm:$0xff] %v76_v31  ;;  %v124_v38 = vmul.f32 %v123_v25, %v308_v15  ;;  %v128_v39 = vmul.f32 %v123_v25, %v113_v24  ;;  %83 = vst [vmem:[#allocation5 + $0x28] sm:$0xff] %v80_v32  ;;  %v132_v41 = vmul.f32 15.0, %v34_v20 }
  0x18   :  { %v42_v36 = vmul.f32 0.5, %v41_v28  ;;  %v48_v37 = vmul.f32 %v47_v29, %v29_v1  ;;  %v86_v40 = vsub.f32 %v85_v22, %v84_v33  ;;  %121 = vst [vmem:[#allocation5 + $0x20] sm:$0xff] %v118_v35  ;;  %v146_v42 = vmul.f32 %v113_v24, %v298_v3 }
  0x19   :  { %v98_v45 = vmul.f32 %v97_v34, %v74_v14  ;;  %127 = vst [vmem:[#allocation5 + $0x70] sm:$0xff] %v124_v38  ;;  %131 = vst [vmem:[#allocation5 + $0x50] sm:$0xff] %v128_v39  ;;  %v148_v46 = vmul.f32 %v308_v15, %v298_v3  ;;  %v134_v48 = vsub.f32 %v133_v26, %v132_v41  ;;  %v160_v53 = vmul.f32 -0.016858388, %v159_v19 }
  0x1a   :  { %v43_v43 = vmul.f32 0.63078314, %v42_v36  ;;  %v50_v44 = vmul.f32 %v49_v9, %v42_v36  ;;  %v87_v47 = vmul.f32 0.5, %v86_v40  ;;  %v147_v49 = vsub.f32 %v145_v27, %v146_v42 }
  0x1b   :  { %v149_v50 = vmul.f32 %v113_v24, %v296_v2  ;;  %v58_v52 = vmul.f32 %v57_v30, %v42_v36  ;;  %v135_v56 = vmul.f32 0.5, %v134_v48 }
  0x1c   :  { %46 = vst [vmem:[#allocation5 + $0x30] sm:$0xff] %v43_v43  ;;  %v51_v51 = vsub.f32 %v50_v44, %v48_v37  ;;  %v88_v54 = vmul.f32 -0.3046972, %v87_v47  ;;  %v99_v55 = vmul.f32 %v87_v47, %v304_v10  ;;  %v151_v57 = vmul.f32 0.5900436, %v147_v49 }
  0x1d   :  { %v150_v59 = vadd.f32 %v149_v50, %v148_v46  ;;  %v161_v60 = vmul.f32 %v160_v53, %v147_v49  ;;  %v169_v61 = vmul.f32 %v147_v49, %v296_v2  ;;  %v136_v1 = vmul.f32 0.063078314, %v135_v56 }
  0x1e   :  { %v52_v58 = vmul.f32 0.33333334, %v51_v51  ;;  %v89_v62 = vmul.f32 %v88_v54, %v296_v2  ;;  %v93_v63 = vmul.f32 %v88_v54, %v298_v3  ;;  %v100_v0 = vsub.f32 %v99_v55, %v98_v45  ;;  %154 = vst [vmem:[#allocation5 + $0x78] sm:$0xff] %v151_v57 }
  0x1f   :  { %v155_v6 = vmul.f32 0.5900436, %v150_v59  ;;  %164 = vst [vmem:[#allocation5 + $0xb8] sm:$0xff] %v161_v60  ;;  %v165_v7 = vmul.f32 %v160_v53, %v150_v59  ;;  %v137_v9 = vmul.f32 %v136_v1, %v308_v15  ;;  %v141_v11 = vmul.f32 %v136_v1, %v113_v24 }
  0x20   :  { %v53_v4 = vmul.f32 0.7463527, %v52_v58  ;;  %v60_v5 = vmul.f32 %v304_v10, %v52_v58  ;;  %92 = vst [vmem:[#allocation5 + $0x68] sm:$0xff] %v89_v62  ;;  %96 = vst [vmem:[#allocation5 + $0x58] sm:$0xff] %v93_v63  ;;  %v101_v8 = vmul.f32 0.33333334, %v100_v0  ;;  %v170_v12 = vmul.f32 %v150_v59, %v298_v3 }
  0x21   :  { %158 = vst [vmem:[#allocation5 + $0x48] sm:$0xff] %v155_v6  ;;  %168 = vst [vmem:[#allocation5 + $0x88] sm:$0xff] %v165_v7  ;;  %v172_v14 = vmul.f32 %v147_v49, %v298_v3  ;;  %v173_v16 = vmul.f32 %v150_v59, %v296_v2 }
  0x22   :  { %56 = vst [vmem:[#allocation5 + $0x60] sm:$0xff] %v53_v4  ;;  %v61_v13 = vsub.f32 %v60_v5, %v58_v52  ;;  %v102_v10 = vmul.f32 -0.26761863, %v101_v8  ;;  %140 = vst [vmem:[#allocation5 + $0xb0] sm:$0xff] %v137_v9  ;;  %v171_v17 = vsub.f32 %v169_v61, %v170_v12 }
  0x23   :  { %144 = vst [vmem:[#allocation5 + $0x90] sm:$0xff] %v141_v11  ;;  %v174_v19 = vadd.f32 %v173_v16, %v172_v14 }
  0x24   :  { %v62_v18 = vmul.f32 0.25, %v61_v13  ;;  %v103_v15 = vmul.f32 %v102_v10, %v296_v2  ;;  %v107_v20 = vmul.f32 %v102_v10, %v298_v3  ;;  %v175_v21 = vmul.f32 0.6258357, %v171_v17 }
  0x25   :  { %v179_v23 = vmul.f32 0.6258357, %v174_v19 }
  0x26   :  { %v63_v22 = vmul.f32 0.8462844, %v62_v18  ;;  %106 = vst [vmem:[#allocation5 + $0xa8] sm:$0xff] %v103_v15  ;;  %110 = vst [vmem:[#allocation5 + $0x98] sm:$0xff] %v107_v20 }
  0x27   :  { %178 = vst [vmem:[#allocation5 + $0xc0] sm:$0xff] %v175_v21  ;;  %182 = vst [vmem:[#allocation5 + $0x80] sm:$0xff] %v179_v23 }
  0x28   :  { %66 = vst [vmem:[#allocation5 + $0xa0] sm:$0xff] %v63_v22 }
  0x29   :  { %262 = shalt.err (!%p259_p9)
}
  0x2a   :  { %194 = dma.vmem_to_hbm [thread:$0]  %s189_s13, 3200, %s341_s1, [#allocation4], %s276_s9, %s276_s9, %s277_s10  }
  0x2b   :  { %273 = dma.done.wait [#allocation4], 3200  }
  0x2c   :  { %274 = vsyncadd [#allocation4], 4294964096 }
  0x2d   :  { %198 = vsyncpa [#allocation3], 1 }
  0x2e   :  { %199 = vsyncpa [#allocation4], 1 }

</bundles_post_ra>
